<compile_context>
chip_gen: v7x
topology: tpu7x:2x2x1
jax: 0.10.0
libtpu: 0.0.40
codegen_flags: <defaults>
</compile_context>

<pallas_src>
import functools

import jax
import jax.numpy as jnp
from jax import lax
from jax.experimental import pallas as pl
from jax.experimental.pallas import tpu as pltpu

_LANE = 128
_MAX_TILE_LANES = 2048  # lane-dense tile width; (C, 2048) f32 is only ~64 KiB at C=8


def _bce_inbatch_kernel(xt_ref, out_ref, *, selection: str, n_groups: int,
                        tile_lanes: int):
    tile = pl.program_id(0)
    x = xt_ref[...].astype(jnp.float32)            # (C, TILE): groups on lanes
    C = x.shape[0]

    # Stable BCEWithLogits: y=0 -> softplus(x); y=1 -> softplus(x) - x.
    sp = jnp.maximum(x, 0.0) + jnp.log1p(jnp.exp(-jnp.abs(x)))

    row = lax.broadcasted_iota(jnp.int32, x.shape, 0)
    is_pos = row == 0                              # sublane 0 == original column 0

    # Positive-column loss per group (lane).
    pos = jnp.sum(jnp.where(is_pos, sp - x, 0.0), axis=0, keepdims=True)   # (1, TILE)

    # Negative term per group.
    if selection == "hard":
        neg = jnp.max(jnp.where(is_pos, -jnp.inf, sp), axis=0, keepdims=True)
    else:  # 'mean'
        neg = jnp.sum(jnp.where(is_pos, 0.0, sp), axis=0, keepdims=True) * (1.0 / (C - 1))

    contrib = pos + neg                            # (1, TILE) per-group contribution

    # Mask padded lanes (group index >= n_groups) to zero, then reduce the
    # whole tile to a single f32 partial sum so the output is tiny.
    lane = lax.broadcasted_iota(jnp.int32, contrib.shape, 1)
    valid = (tile * tile_lanes + lane) < n_groups
    masked = jnp.where(valid, contrib, 0.0)                                # (1, TILE)
    out_ref[...] = jnp.sum(masked, axis=1, keepdims=True)[None]            # (1, 1, 1)


def pointwise_inbatch_bce_loss(
    logits,
    labels=None,  # unused by the reference forward()
    *,
    examples_per_group: int = 1,
    reduction: str = "none",
    batch_size=None,
    negative_selection: str = "hard",
):
    # Same consistency assert as the PyTorch module.
    assert (negative_selection != "all") == (reduction == "none"), (
        "reduction should be the none thus negative selection."
    )
    # TODO(synk): negative_selection='all' (reduction='mean') and 'random'
    # (torch.randint sampling) paths are not implemented here; 'random' has no
    # bit-exact torch RNG equivalent.
    assert negative_selection in ("hard", "mean")

    if batch_size:
        mat = logits.reshape(batch_size, -1)
    else:
        mat = logits.reshape(-1, examples_per_group)
    R, C = mat.shape
    assert C >= 2, "need at least one negative per group"

    # Lane-dense layout: groups -> lanes, examples-per-group -> sublanes.
    # Keep the original dtype (no f32 upcast in HBM).
    mat_t = mat.T                                   # (C, R)

    rp128 = pl.cdiv(R, _LANE) * _LANE
    tile_lanes = min(rp128, _MAX_TILE_LANES)
    n_tiles = pl.cdiv(R, tile_lanes)
    r_pad = n_tiles * tile_lanes
    if r_pad != R:
        mat_t = jnp.pad(mat_t, ((0, 0), (0, r_pad - R)))

    kernel = functools.partial(
        _bce_inbatch_kernel,
        selection=negative_selection,
        n_groups=R,
        tile_lanes=tile_lanes,
    )

    n_el = C * r_pad
    cost = pl.CostEstimate(
        flops=8 * n_el,
        transcendentals=2 * n_el,                   # exp + log1p per element
        bytes_accessed=n_el * mat_t.dtype.itemsize + n_tiles * 4,
    )

    partials = pl.pallas_call(
        kernel,
        out_shape=jax.ShapeDtypeStruct((n_tiles, 1, 1), jnp.float32),
        grid=(n_tiles,),
        in_specs=[pl.BlockSpec((C, tile_lanes), lambda i: (0, i))],
        out_specs=pl.BlockSpec((1, 1, 1), lambda i: (i, 0, 0)),
        compiler_params=pltpu.CompilerParams(
            dimension_semantics=("parallel",),
            vmem_limit_bytes=32 * 1024 * 1024,
        ),
        cost_estimate=cost,
    )(mat_t)

    # (mean(pos) + mean(neg_term)) / 2 == sum_over_groups(pos + neg_term) / (2 R)
    return jnp.sum(partials) / (2.0 * R)


def _reference(logits, *, examples_per_group, negative_selection):
    mat = logits.reshape(-1, examples_per_group).astype(jnp.float32)
    y = jnp.zeros_like(mat).at[:, 0].set(1.0)
    loss = jnp.maximum(mat, 0.0) - mat * y + jnp.log1p(jnp.exp(-jnp.abs(mat)))
    pos = jnp.mean(loss[:, 0])
    if negative_selection == "hard":
        neg = jnp.mean(jnp.max(loss[:, 1:], axis=-1))
    else:
        neg = jnp.mean(loss[:, 1:])
    return (pos + neg) / 2.0


if __name__ == "__main__":
    key = jax.random.PRNGKey(0)

    # (n_groups, examples_per_group, dtype) configs:
    #  - tiny f32 case matching the original test shape
    #  - bf16 case with lane padding (groups not a multiple of 128)
    #  - larger f32 case exercising multiple lane tiles (parallel grid)
    configs = [
        (8, 8, jnp.float32),
        (300, 8, jnp.bfloat16),
        (3000, 8, jnp.float32),
    ]

    ok = True
    for n_groups, epg, dtype in configs:
        key, k1, k2 = jax.random.split(key, 3)
        logits = jax.random.normal(k1, (n_groups * epg,), dtype=jnp.float32).astype(dtype)
        labels = jax.random.bernoulli(k2, 0.5, (n_groups * epg,)).astype(jnp.float32)

        for sel in ("hard", "mean"):
            out = pointwise_inbatch_bce_loss(
                logits,
                labels,
                examples_per_group=epg,
                reduction="none",
                negative_selection=sel,
            )
            out = jax.block_until_ready(out)
            ref = _reference(logits, examples_per_group=epg, negative_selection=sel)
            if not jnp.allclose(out, ref, atol=1e-4, rtol=1e-4):
                ok = False
                print("MISMATCH", n_groups, epg, dtype, sel, float(out), float(ref))

    if ok:
        print("KERNEL_OK")
</pallas_src>

<mosaic_0001>
module attributes {stable_mosaic.version = 11 : i64} {
  func.func @_bce_inbatch_kernel(%arg0: i32, %arg1: memref<8x128xf32, #tpu.memory_space<vmem>>, %arg2: memref<1x1x1xf32, #tpu.memory_space<vmem>>) attributes {dimension_semantics = [#tpu.dimension_semantics<parallel>], iteration_bounds = array<i64: 1>, scalar_prefetch = 0 : i64, scratch_operands = 0 : i64, tpu.core_type = #tpu.core_type<tc>, window_params = [{transform_indices = @transform_0, window_bounds = array<i64: 8, 128>}, {transform_indices = @transform_1, window_bounds = array<i64: 1, 1, 1>}]} {
    %c0 = arith.constant 0 : index
    %c0_0 = arith.constant 0 : index
    %0 = vector.load %arg1[%c0, %c0_0] : memref<8x128xf32, #tpu.memory_space<vmem>>, vector<8x128xf32>
    %cst = arith.constant 0.000000e+00 : f32
    %1 = vector.broadcast %cst : f32 to vector<8x128xf32>
    %2 = arith.maximumf %0, %1 : vector<8x128xf32>
    %3 = math.absf %0 : vector<8x128xf32>
    %cst_1 = arith.constant 0.000000e+00 : f32
    %4 = vector.broadcast %cst_1 : f32 to vector<8x128xf32>
    %5 = arith.subf %4, %3 : vector<8x128xf32>
    %6 = math.exp %5 : vector<8x128xf32>
    %7 = math.log1p %6 : vector<8x128xf32>
    %8 = arith.addf %2, %7 : vector<8x128xf32>
    %9 = tpu.iota {dimensions = array<i32: 0>} : vector<8x128xi32>
    %c0_i32 = arith.constant 0 : i32
    %10 = vector.broadcast %c0_i32 : i32 to vector<8x128xi32>
    %11 = arith.cmpi eq, %9, %10 : vector<8x128xi32>
    %12 = arith.subf %8, %0 : vector<8x128xf32>
    %cst_2 = arith.constant 0.000000e+00 : f32
    %13 = vector.broadcast %cst_2 : f32 to vector<8x128xf32>
    %14 = arith.select %11, %12, %13 : vector<8x128xi1>, vector<8x128xf32>
    %cst_3 = arith.constant dense<0.000000e+00> : vector<128xf32>
    %15 = vector.multi_reduction <add>, %14, %cst_3 [0] : vector<8x128xf32> to vector<128xf32>
    %16 = vector.shape_cast %15 : vector<128xf32> to vector<1x128xf32>
    %cst_4 = arith.constant 0xFF800000 : f32
    %17 = vector.broadcast %cst_4 : f32 to vector<8x128xf32>
    %18 = arith.select %11, %17, %8 : vector<8x128xi1>, vector<8x128xf32>
    %cst_5 = arith.constant dense<0xFF800000> : vector<128xf32>
    %19 = vector.multi_reduction <maximumf>, %18, %cst_5 [0] : vector<8x128xf32> to vector<128xf32>
    %20 = vector.shape_cast %19 : vector<128xf32> to vector<1x128xf32>
    %21 = arith.addf %16, %20 : vector<1x128xf32>
    %22 = tpu.iota {dimensions = array<i32: 1>} : vector<1x128xi32>
    %c128_i32 = arith.constant 128 : i32
    %23 = arith.muli %arg0, %c128_i32 : i32
    %24 = vector.broadcast %23 : i32 to vector<1x128xi32>
    %25 = arith.addi %24, %22 : vector<1x128xi32>
    %c8_i32 = arith.constant 8 : i32
    %26 = vector.broadcast %c8_i32 : i32 to vector<1x128xi32>
    %27 = arith.cmpi slt, %25, %26 : vector<1x128xi32>
    %cst_6 = arith.constant 0.000000e+00 : f32
    %28 = vector.broadcast %cst_6 : f32 to vector<1x128xf32>
    %29 = arith.select %27, %21, %28 : vector<1x128xi1>, vector<1x128xf32>
    %cst_7 = arith.constant dense<0.000000e+00> : vector<1xf32>
    %30 = vector.multi_reduction <add>, %29, %cst_7 [1] : vector<1x128xf32> to vector<1xf32>
    %31 = vector.shape_cast %30 : vector<1xf32> to vector<1x1xf32>
    %32 = vector.shape_cast %31 : vector<1x1xf32> to vector<1x1x1xf32>
    %c0_8 = arith.constant 0 : index
    %c0_9 = arith.constant 0 : index
    %c0_10 = arith.constant 0 : index
    %33 = vector.load %arg2[%c0_8, %c0_9, %c0_10] : memref<1x1x1xf32, #tpu.memory_space<vmem>>, vector<1x1x1xf32>
    tpu.vector_store %arg2[%c0_8, %c0_9, %c0_10], %32 {strides = array<i32>} : memref<1x1x1xf32, #tpu.memory_space<vmem>>, vector<1x1x1xf32>,
    return
  }
  func.func @transform_0(%arg0: i32) -> (i32, i32) {
    %c0_i32 = arith.constant 0 : i32
    %c0_i32_0 = arith.constant 0 : i32
    return %c0_i32, %arg0 : i32, i32
  }
  func.func @transform_1(%arg0: i32) -> (i32, i32, i32) {
    %c0_i32 = arith.constant 0 : i32
    %c0_i32_0 = arith.constant 0 : i32
    %c0_i32_1 = arith.constant 0 : i32
    return %arg0, %c0_i32, %c0_i32_0 : i32, i32, i32
  }
}

</mosaic_0001>

<bundles_post_ra>
// kernel: tpu_custom_call.1
= control target key start
LH: loop header
LB: loop body
LE: loop exit
PB: predicated region body
PF: predicated region fallthrough
CT: control target
= control target key end

     0   :  { %6 = vsyncpa [#allocation3], 0  ;;  %s172_s0 = inlined_call_operand.hbm [shape: f32[8,128], index: 0, kind: input, shape index: {}]   ;;  %s173_s1 = inlined_call_operand.hbm [shape: f32[1,1,1], index: 1, kind: output, shape index: {}]  }
   0x1   :  { %7 = vsyncpa [#allocation4], 0  ;;  %s136_s6 = smov [#allocation2]   ;;  %s88_s10 = scalar_lea.hbm %s172_s0, 128 }
   0x2   :  { %s14_s7 = sshll.u32 %s136_s6, 4  ;;  %p89_p0 = scmp.ne.s32.totalorder %s172_s0, %s88_s10  ;;  %s15_s7 = int_to_ptr.vmem [resolvable:$true] %s14_s7 }
   0x3   :  { %p92_p1 = scmp.lt.u32.totalorder %s88_s10, %s172_s0 }
   0x5   :  { %p94_p2 = pnand %p92_p1, %p89_p0 }
   0x7   :  { %97 = shalt.err (!%p94_p2)
}
   0x8   :  { %s98_s15 = scalar_lea.vmem %s15_s7, 128  ;;  %p103_p4 = scmp.lt.s32.totalorder %s15_s7, %s15_s7 }
   0x9   :  { %p99_p3 = scmp.ne.s32.totalorder %s15_s7, %s98_s15  ;;  %p104_p5 = scmp.lt.s32.totalorder %s98_s15, %s98_s15 }
   0xb   :  { %p105_p6 = por %p104_p5, %p103_p4 }
   0xd   :  { %p106_p7 = pnand %p105_p6, %p99_p3 }
   0xf   :  { %109 = shalt.err (!%p106_p7)
}
  0x10   :  { %17 = dma.hbm_to_vmem [thread:$0]  %s172_s0, 128, %s15_s7, [#allocation3]  }
  0x11   :  { %132 = dma.done.wait [#allocation3], 128  }
  0x12   :  { %133 = vsyncadd [#allocation3], 4294967168  ;;  %v21_v0 = vld [vmem:[#allocation2] sm:$0xff]  ;;  %v37_v8 = vlaneseq  ;;  %s137_s0 = smov [#allocation5]   ;;  %vm65_vm3 = vcmask 0  }
  0x13   :  { %v23_v1 = vand.u32 2147483647, %v21_v0  ;;  %v22_v13 = vmax.f32 %v21_v0, 0.0  ;;  %s73_s18 = sshll.u32 %s137_s0, 4  ;;  %s74_s18 = int_to_ptr.vmem [resolvable:$true] %s73_s18 }
  0x14   :  { %v38_v11 = vshrl.u32 %v37_v8, 7  ;;  %v57_v29 = vand.u32 127, %v37_v8  ;;  %s110_s19 = scalar_lea.vmem %s74_s18, 16  ;;  %s114_s20 = scalar_lea.vmem %s74_s18, 32 }
  0x15   :  { %v24_v2 = vsub.f32 0.0, %v23_v1  ;;  %p111_p8 = scmp.ne.s32.totalorder %s74_s18, %s110_s19  ;;  %p115_p9 = scmp.lt.s32.totalorder %s74_s18, %s74_s18 }
  0x16   :  { %vm39_vm1 = vcmp.eq.s32.totalorder %v38_v11, 0  ;;  %vm61_vm2 = vcmp.lt.s32.totalorder %v57_v29, 8  ;;  %p116_p10 = scmp.lt.s32.totalorder %s114_s20, %s110_s19 }
  0x17   :  { %v25_v3 = vmul.f32 1.442695, %v24_v2 }
  0x18   :  { %p117_p11 = por %p116_p10, %p115_p9 }
  0x19   :  { %84 = vpow2.f32 %v25_v3 }
  0x1a   :  { %p118_p12 = pnand %p117_p11, %p111_p8 }
  0x23   :  { %v85_v4 = vpop.eup %84 }
  0x24   :  { %v27_v5 = vadd.f32 1.0, %v85_v4  ;;  %v30_v6 = vmul.f32 -0.5, %v85_v4  ;;  %v33_v9 = vand.u32 2147483647, %v85_v4 }
  0x26   :  { %86 = vlog2.f32 %v27_v5  ;;  %v31_v7 = vadd.f32 1.0, %v30_v6  ;;  %vm34_vm0 = vcmp.lt.f32.partialorder %v33_v9, 0.0004427343 }
  0x28   :  { %v32_v10 = vmul.f32 %v85_v4, %v31_v7 }
  0x30   :  { %v87_v12 = vpop.eup %86 }
  0x31   :  { %v29_v14 = vmul.f32 0.6931472, %v87_v12 }
  0x33   :  { %v35_v15 = vsel %vm34_vm0, %v32_v10, %v29_v14 }
  0x34   :  { %v36_v16 = vadd.f32 %v35_v15, %v22_v13 }
  0x36   :  { %v40_v17 = vsub.f32 %v36_v16, %v21_v0  ;;  %v48_v18 = vsel %vm39_vm1, -inf, %v36_v16 }
  0x37   :  { %v49_v19 = vrot.slane %v48_v18, 4 }
  0x38   :  { %v41_v20 = vsel %vm39_vm1, %v40_v17, 0.0 }
  0x39   :  { %v42_v21 = vrot.slane %v41_v20, 4  ;;  %v50_v22 = vmax.f32 %v48_v18, %v49_v19 }
  0x3b   :  { %v43_v23 = vadd.f32 %v42_v21, %v41_v20  ;;  %v51_v24 = vrot.slane %v50_v22, 2 }
  0x3d   :  { %v44_v25 = vrot.slane %v43_v23, 2  ;;  %v52_v26 = vmax.f32 %v50_v22, %v51_v24 }
  0x3f   :  { %v45_v27 = vadd.f32 %v44_v25, %v43_v23  ;;  %v53_v28 = vrot.slane %v52_v26, 1 }
  0x41   :  { %v46_v30 = vrot.slane %v45_v27, 1  ;;  %v54_v31 = vmax.f32 %v52_v26, %v53_v28 }
  0x43   :  { %v47_v32 = vadd.f32 %v46_v30, %v45_v27 }
  0x45   :  { %v55_v33 = vadd.f32 %v54_v31, %v47_v32 }
  0x47   :  { %v62_v34 = vsel %vm61_vm2, %v55_v33, 0.0 }
  0x48   :  { %63 = vadd.xlane.f32.xlu0 %v62_v34 }
  0xd5   :  { %v64_v35 = vpop.xlane.xlu0 %63 }
  0xd6   :  { %66 = vst.msk [vmem:[#allocation5] sm:$0x1] %vm65_vm3, %v64_v35 }
  0xd7   :  { %121 = shalt.err (!%p118_p12)
}
  0xd8   :  { %s122_s23 = scalar_lea.hbm %s173_s1, 16 }
  0xd9   :  { %p123_p13 = scmp.ne.s32.totalorder %s173_s1, %s122_s23  ;;  %p126_p0 = scmp.lt.u32.totalorder %s122_s23, %s173_s1 }
  0xdb   :  { %p128_p1 = pnand %p126_p0, %p123_p13 }
  0xdd   :  { %131 = shalt.err (!%p128_p1)
}
  0xde   :  { %76 = dma.vmem_to_hbm [thread:$0]  %s74_s18, 16, %s173_s1, [#allocation4]  }
  0xdf   :  { %134 = dma.done.wait [#allocation4], 16  }
  0xe0   :  { %135 = vsyncadd [#allocation4], 4294967280 }
  0xe1   :  { %80 = vsyncpa [#allocation3], 1 }
  0xe2   :  { %81 = vsyncpa [#allocation4], 1 }

</bundles_post_ra>
